<compile_context>
chip_gen: v7x
topology: tpu7x:2x2x1
jax: 0.10.0
libtpu: 0.0.40
codegen_flags: <defaults>
</compile_context>

<pallas_src>
import functools

import jax
import jax.numpy as jnp
import numpy as np
from jax.experimental import pallas as pl
from jax.experimental.pallas import tpu as pltpu


def _round_up(x, m):
    return ((x + m - 1) // m) * m


_TM_CANDIDATES = (512, 256, 128, 64, 32, 16)        # multiples of 16 (bf16 sublane packing)
_TK_CANDIDATES = (4096, 2048, 1024, 512, 256, 128)  # multiples of 128 (lane width)
_MAX_PAD_WASTE = 0.125                              # cap zero-padding of the HBM-bound A stream
_Y_RESIDENT_BYTES = 6 * 1024 * 1024                 # keep Y fully VMEM-resident below this


def _pick_tile(n, candidates, max_waste=_MAX_PAD_WASTE):
    """Largest aligned tile whose zero-padding waste stays bounded."""
    fallback = None
    for c in candidates:                     # descending
        n_pad = _round_up(n, c)
        waste = (n_pad - n) / max(n, 1)
        if waste <= max_waste:
            return c
        if fallback is None or n_pad < fallback[1]:
            fallback = (c, n_pad)
    return fallback[0]


def _select_tiles(n_nodes, k_total):
    tm = _pick_tile(n_nodes, _TM_CANDIDATES)
    # v7x megacore: give the 'parallel' row axis >= 2 tiles so both TensorCores
    # get work, as long as it does not add padding.
    while _round_up(n_nodes, tm) // tm < 2 and tm >= 32:
        half = tm // 2
        if _round_up(n_nodes, half) > _round_up(n_nodes, tm):
            break
        tm = half
    tk = _pick_tile(k_total, _TK_CANDIDATES)
    return tm, tk, _round_up(n_nodes, tm), _round_up(k_total, tk)


# ----------------------------------------------------------------------------
# Pallas kernel: streamed tiled matmul, resident f32 output-block accumulator.
#   grid = (N_pad // tm, K_pad // tk)  with axes ('parallel', 'arbitrary')
#   out_tile = sum_k A_tile(i,k) @ Y_tile(k)
# ----------------------------------------------------------------------------
def _rgcn_agg_kernel(a_ref, y_ref, o_ref, *, tk, y_resident):
    k = pl.program_id(1)

    @pl.when(k == 0)
    def _init():
        o_ref[...] = jnp.zeros_like(o_ref)

    if y_resident:
        off = pl.multiple_of(k * tk, tk)
        y_tile = y_ref[pl.ds(off, tk), :]
    else:
        y_tile = y_ref[...]

    # bf16 x bf16 -> f32 on the MXU
    o_ref[...] += jnp.dot(a_ref[...], y_tile, preferred_element_type=jnp.float32)


def rgcn_conv_pallas(A_bf, x, att, basis, root, bias, *, apply_relu,
                     num_nodes, num_relations, tm, tk):
    """One RGCNConv layer (mean aggregation, basis decomposition).

    A_bf : [N_pad, K_pad] bf16 normalized flattened adjacency (built once in
           rgcn_forward and shared by both conv layers).
    """
    N_pad, K_pad = A_bf.shape
    N, R = num_nodes, num_relations
    D_in = x.shape[1]
    D_out = root.shape[1]
    K = R * N

    # --- tiny JAX glue: basis decomposition + per-relation transforms --------
    W = jnp.matmul(att, basis.reshape(basis.shape[0], -1)).reshape(R, D_in, D_out)
    Y = jnp.einsum("nd,rdo->rno", x.astype(jnp.float32), W).reshape(K, D_out)
    if K_pad != K:
        Y = jnp.pad(Y, ((0, K_pad - K), (0, 0)))
    Y_bf = Y.astype(jnp.bfloat16)
    # TODO(synk): int8 (v5e/v6e) / fp8-e4m3 (v7x) quantization of A with per-row
    # scales would roughly halve the HBM-bound A traffic.

    y_resident = K_pad * D_out * 2 <= _Y_RESIDENT_BYTES
    if y_resident:
        # Whole Y loaded once (constant block index) and kept in VMEM.
        y_spec = pl.BlockSpec((K_pad, D_out), lambda i, k: (0, 0))
    else:
        y_spec = pl.BlockSpec((tk, D_out), lambda i, k: (k, 0))

    kernel = functools.partial(_rgcn_agg_kernel, tk=tk, y_resident=y_resident)

    agg = pl.pallas_call(
        kernel,
        out_shape=jax.ShapeDtypeStruct((N_pad, D_out), jnp.float32),
        grid=(N_pad // tm, K_pad // tk),
        in_specs=[
            pl.BlockSpec((tm, tk), lambda i, k: (i, k)),   # A tile (bf16 HBM stream)
            y_spec,                                        # Y (resident or streamed)
        ],
        out_specs=pl.BlockSpec((tm, D_out), lambda i, k: (i, 0)),  # resident accumulator
        compiler_params=pltpu.CompilerParams(
            dimension_semantics=("parallel", "arbitrary"),
        ),
    )(A_bf, Y_bf)

    # root transform + bias (and relu) folded in after the kernel (cheap glue)
    out = agg[:N] + x.astype(jnp.float32) @ root + bias.reshape(1, D_out)
    if apply_relu:
        out = jax.nn.relu(out)
    return out


# ----------------------------------------------------------------------------
# Glue: graph -> flattened normalized adjacency, built ONCE at padded shape.
# ----------------------------------------------------------------------------
def build_flat_adjacency(edge_index, edge_type, edge_norm, num_nodes,
                         num_relations, n_pad, k_pad):
    """A[i, r*N + j] = edge_norm(e) / in_deg(i) for every edge j->i of rel r.

    RGCNConv uses aggr='mean' (pool over ALL incoming edges of a node), so the
    1/deg factor uses the total in-degree across relations.  Built directly at
    the padded (N_pad, K_pad) shape, scatter-accumulated in f32 (duplicate
    edges), cast to bf16 exactly once and reused by both conv layers.
    """
    # TODO(synk): for large graphs replace this dense O(R*N^2) adjacency with a
    # CSR/edge-list gather kernel (PrefetchScalarGridSpec row-pointer prefetch).
    src, dst = edge_index[0], edge_index[1]
    deg = jnp.zeros((num_nodes,), jnp.float32).at[dst].add(1.0)
    inv_deg = jnp.where(deg > 0, 1.0 / jnp.maximum(deg, 1.0), 0.0)
    vals = edge_norm.astype(jnp.float32) * inv_deg[dst]
    A = jnp.zeros((n_pad, k_pad), jnp.float32)
    A = A.at[dst, edge_type * num_nodes + src].add(vals)
    return A.astype(jnp.bfloat16)


# ----------------------------------------------------------------------------
# Full RGCN forward (matches RGCN.forward of the PyTorch module, eval mode)
# ----------------------------------------------------------------------------
def rgcn_forward(params, entity, edge_index, edge_type, edge_norm):
    num_relations = params["att1"].shape[0]   # already = 2 * raw relations
    x = jnp.take(params["entity_embedding"], entity, axis=0)   # embedding lookup (glue)
    N = x.shape[0]
    K = num_relations * N

    tm, tk, n_pad, k_pad = _select_tiles(N, K)
    # Padded bf16 adjacency built + cast ONCE, shared by conv1 and conv2.
    A_bf = build_flat_adjacency(edge_index, edge_type, edge_norm, N,
                                num_relations, n_pad, k_pad)

    # conv1 + relu
    x = rgcn_conv_pallas(A_bf, x, params["att1"], params["basis1"],
                         params["root1"], params["bias1"], apply_relu=True,
                         num_nodes=N, num_relations=num_relations, tm=tm, tk=tk)
    # TODO(synk): F.dropout is only active in training mode; eval forward is identity.
    # conv2
    x = rgcn_conv_pallas(A_bf, x, params["att2"], params["basis2"],
                         params["root2"], params["bias2"], apply_relu=False,
                         num_nodes=N, num_relations=num_relations, tm=tm, tk=tk)
    return x


# ----------------------------------------------------------------------------
# Pure-JAX reference (edge-wise message passing, literal RGCNConv translation)
# ----------------------------------------------------------------------------
def _rgcn_conv_ref(x, edge_index, edge_type, edge_norm, att, basis, root, bias):
    R = att.shape[0]
    D_in = x.shape[1]
    D_out = root.shape[1]
    W = jnp.matmul(att, basis.reshape(basis.shape[0], -1)).reshape(R, D_in, D_out)
    src, dst = edge_index[0], edge_index[1]
    msg = jnp.einsum("ed,edo->eo", x[src], W[edge_type]) * edge_norm[:, None]
    N = x.shape[0]
    agg_sum = jnp.zeros((N, D_out), jnp.float32).at[dst].add(msg)
    deg = jnp.zeros((N,), jnp.float32).at[dst].add(1.0)
    agg = jnp.where(deg[:, None] > 0, agg_sum / jnp.maximum(deg, 1.0)[:, None], 0.0)
    return agg + x @ root + bias


def rgcn_forward_ref(params, entity, edge_index, edge_type, edge_norm):
    x = jnp.take(params["entity_embedding"], entity, axis=0)
    x = jax.nn.relu(_rgcn_conv_ref(x, edge_index, edge_type, edge_norm,
                                   params["att1"], params["basis1"],
                                   params["root1"], params["bias1"]))
    x = _rgcn_conv_ref(x, edge_index, edge_type, edge_norm,
                       params["att2"], params["basis2"],
                       params["root2"], params["bias2"])
    return x


# ----------------------------------------------------------------------------
# Deterministic parameter init (shapes from RGCN.__init__ / RGCNConv.__init__)
# ----------------------------------------------------------------------------
def init_params(key, num_entities, num_relations, num_bases, dim_size):
    R = num_relations * 2  # RGCN uses num_relations * 2 relation types per conv
    ks = jax.random.split(key, 10)
    bound = 1.0 / np.sqrt(num_bases * dim_size)

    def u(k, shape):
        return jax.random.uniform(k, shape, jnp.float32, -bound, bound)

    return {
        "entity_embedding": jax.random.normal(ks[0], (num_entities, dim_size), jnp.float32),
        "relation_embedding": jax.random.normal(ks[1], (num_relations, dim_size), jnp.float32)
        * np.sqrt(2.0 / (num_relations + dim_size)) * np.sqrt(2.0),
        # conv1
        "basis1": u(ks[2], (num_bases, dim_size, dim_size)),
        "att1": u(ks[3], (R, num_bases)),
        "root1": u(ks[4], (dim_size, dim_size)),
        "bias1": u(ks[5], (dim_size,)),
        # conv2
        "basis2": u(ks[6], (num_bases, dim_size, dim_size)),
        "att2": u(ks[7], (R, num_bases)),
        "root2": u(ks[8], (dim_size, dim_size)),
        "bias2": u(ks[9], (dim_size,)),
    }


if __name__ == "__main__":
    key = jax.random.PRNGKey(0)

    num_entities = 50     # embedding table rows
    num_relations = 4     # -> 8 relation types inside each conv
    num_bases = 3
    dim_size = 32
    num_nodes = 32        # sampled subgraph size (len(entity))
    num_edges = 64

    k_param, k_ent, k_src, k_dst, k_rel, k_norm = jax.random.split(key, 6)
    params = init_params(k_param, num_entities, num_relations, num_bases, dim_size)

    entity = jax.random.randint(k_ent, (num_nodes,), 0, num_entities, dtype=jnp.int32)
    src = jax.random.randint(k_src, (num_edges,), 0, num_nodes, dtype=jnp.int32)
    dst = jax.random.randint(k_dst, (num_edges,), 0, num_nodes, dtype=jnp.int32)
    edge_index = jnp.stack([src, dst], axis=0)
    edge_type = jax.random.randint(k_rel, (num_edges,), 0, num_relations * 2, dtype=jnp.int32)
    edge_norm = jax.random.uniform(k_norm, (num_edges,), jnp.float32, 0.5, 1.5)

    out = jax.jit(rgcn_forward)(params, entity, edge_index, edge_type, edge_norm)
    out = jax.block_until_ready(out)

    ref = jax.block_until_ready(
        rgcn_forward_ref(params, entity, edge_index, edge_type, edge_norm)
    )
    # bf16 operand streams with f32 accumulation (two stacked layers) -> relaxed tol
    np.testing.assert_allclose(np.asarray(out), np.asarray(ref), rtol=3e-2, atol=3e-2)

    print("KERNEL_OK")
</pallas_src>

<mosaic_0001>
module attributes {stable_mosaic.version = 11 : i64} {
  func.func private @main(%arg0: i32) attributes {dimension_semantics = [#tpu.dimension_semantics<core_parallel>], iteration_bounds = array<i64: 2>, tpu.core_type = #tpu.core_type<sc_scalar_subcore>, window_params = []} {
    return
  }
}

module attributes {stable_mosaic.version = 11 : i64} {
  func.func private @main(%arg0: i32) attributes {dimension_semantics = [#tpu.dimension_semantics<core_parallel>], iteration_bounds = array<i64: 2>, tpu.core_type = #tpu.core_type<sc_scalar_subcore>, window_params = []} {
    return
  }
}

module attributes {stable_mosaic.version = 11 : i64} {
  func.func @_rgcn_agg_kernel(%arg0: i32, %arg1: i32, %arg2: memref<16x256xbf16, #tpu.memory_space<vmem>>, %arg3: memref<256x32xbf16, #tpu.memory_space<vmem>>, %arg4: memref<16x32xf32, #tpu.memory_space<vmem>>) attributes {dimension_semantics = [#tpu.dimension_semantics<parallel>, #tpu.dimension_semantics<arbitrary>], iteration_bounds = array<i64: 2, 1>, scalar_prefetch = 0 : i64, scratch_operands = 0 : i64, tpu.core_type = #tpu.core_type<tc>, window_params = [{transform_indices = @transform_0, window_bounds = array<i64: 16, 256>}, {pipeline_mode = #tpu.pipeline_mode<synchronous>, transform_indices = @transform_1, window_bounds = array<i64: 256, 32>}, {transform_indices = @transform_2, window_bounds = array<i64: 16, 32>}]} {
    %c0_i32 = arith.constant 0 : i32
    %0 = arith.cmpi eq, %arg1, %c0_i32 : i32
    %1 = arith.extui %0 : i1 to i32
    %c0_i32_0 = arith.constant 0 : i32
    %2 = arith.cmpi ne, %1, %c0_i32_0 : i32
    scf.if %2 {
      %cst_7 = arith.constant 0.000000e+00 : f32
      %12 = vector.broadcast %cst_7 : f32 to vector<16x32xf32>
      %c0_8 = arith.constant 0 : index
      %c0_9 = arith.constant 0 : index
      %13 = vector.load %arg4[%c0_8, %c0_9] : memref<16x32xf32, #tpu.memory_space<vmem>>, vector<16x32xf32>
      tpu.vector_store %arg4[%c0_8, %c0_9], %12 {strides = array<i32>} : memref<16x32xf32, #tpu.memory_space<vmem>>, vector<16x32xf32>,
    } else {
    }
    %c256_i32 = arith.constant 256 : i32
    %3 = arith.muli %arg1, %c256_i32 : i32
    %4 = tpu.assume_multiple %3, 256 : i32
    %5 = arith.index_cast %4 : i32 to index
    %c0 = arith.constant 0 : index
    %6 = vector.load %arg3[%5, %c0] : memref<256x32xbf16, #tpu.memory_space<vmem>>, vector<256x32xbf16>
    %c0_1 = arith.constant 0 : index
    %c0_2 = arith.constant 0 : index
    %7 = vector.load %arg4[%c0_1, %c0_2] : memref<16x32xf32, #tpu.memory_space<vmem>>, vector<16x32xf32>
    %c0_3 = arith.constant 0 : index
    %c0_4 = arith.constant 0 : index
    %8 = vector.load %arg2[%c0_3, %c0_4] : memref<16x256xbf16, #tpu.memory_space<vmem>>, vector<16x256xbf16>
    %cst = arith.constant dense<0.000000e+00> : vector<16x32xf32>
    %9 = tpu.matmul %8, %6, %cst {dimension_numbers = #tpu.dot_dimension_numbers<[1], [0], [0], [1], [0, 0, 1, 1], [], []>} : vector<16x256xbf16>, vector<256x32xbf16>, vector<16x32xf32> -> vector<16x32xf32>
    %10 = arith.addf %7, %9 : vector<16x32xf32>
    %c0_5 = arith.constant 0 : index
    %c0_6 = arith.constant 0 : index
    %11 = vector.load %arg4[%c0_5, %c0_6] : memref<16x32xf32, #tpu.memory_space<vmem>>, vector<16x32xf32>
    tpu.vector_store %arg4[%c0_5, %c0_6], %10 {strides = array<i32>} : memref<16x32xf32, #tpu.memory_space<vmem>>, vector<16x32xf32>,
    return
  }
  func.func @transform_0(%arg0: i32, %arg1: i32) -> (i32, i32) {
    %c0_i32 = arith.constant 0 : i32
    return %arg0, %arg1 : i32, i32
  }
  func.func @transform_1(%arg0: i32, %arg1: i32) -> (i32, i32) {
    %c0_i32 = arith.constant 0 : i32
    %c0_i32_0 = arith.constant 0 : i32
    %c0_i32_1 = arith.constant 0 : i32
    return %c0_i32, %c0_i32_0 : i32, i32
  }
  func.func @transform_2(%arg0: i32, %arg1: i32) -> (i32, i32) {
    %c0_i32 = arith.constant 0 : i32
    %c0_i32_0 = arith.constant 0 : i32
    return %arg0, %c0_i32 : i32, i32
  }
}

</mosaic_0001>

<bundles_post_ra>
// kernel: mul.2
= control target key start
LH: loop header
LB: loop body
LE: loop exit
PB: predicated region body
PF: predicated region fallthrough
CT: control target
= control target key end

     0   :  { %s34_s0 = inlined_call_operand.vmem [shape: f32[64], index: 0, kind: input, shape index: {}]   ;;  %s35_s1 = inlined_call_operand.vmem [shape: f32[64], index: 1, kind: input, shape index: {}]   ;;  %s36_s2 = inlined_call_operand.vmem [shape: f32[64], index: 2, kind: output, shape index: {}]  }
   0x1   :  { %v3_v0 = vld [vmem:[%s34_s0] sm:$0x1] }
   0x2   :  { %v4_v1 = vld [vmem:[%s35_s1] sm:$0x1] }
   0x3   :  { %v7_v2 = vmul.f32 %v4_v1, %v3_v0 }
   0x5   :  { %9 = vst [vmem:[%s36_s2] sm:$0x1] %v7_v2 }

// kernel: rgcn_forward.2
= control target key start
LH: loop header
LB: loop body
LE: loop exit
PB: predicated region body
PF: predicated region fallthrough
CT: control target
= control target key end

     0   :  { %s589_s9 = smov 0   ;;  %s591_s10 = smov 0   ;;  %s682_s0 = inlined_call_operand.vmem [shape: bf16[32,256], index: 0, kind: input, shape index: {}]   ;;  %s683_s1 = inlined_call_operand.vmem [shape: bf16[256,32], index: 1, kind: input, shape index: {}]   ;;  %s684_s2 = inlined_call_operand.vmem [shape: f32[32,32], index: 2, kind: output, shape index: {}]  }
   0x1   :  { %s593_s11 = smov 0  }
   0x2 LB: > { %s24_s12 = sadd.s32 1, %s567_s10  ;;  %p456_p0 = scmp.ge.s32.totalorder %s571_s11, 1  ;;  %s571_s11 = sphi %s593_s11, %s12_s11   ;;  %s567_s10 = sphi %s591_s10, %s686_s10   ;;  %s563_s9 = sphi %s589_s9, %s685_s9  }
   0x3   : > { %p26_p1 = scmp.ge.s32.totalorder %s24_s12, 2  ;;  %p133_p2 = scmp.lt.s32.totalorder %s571_s11, 3 }
   0x5   : > { %s688_s12 = smov (%p26_p1, %s24_s12), 0  ;;  %p134_p3 = pnand %p456_p0, %p133_p2 }
   0x6   : > { %v530_v0 = vld [vmem:[%s683_s1 + $0x40] sm:$0xff] (!%p134_p3)   ;;  %s457_s15 = sshll.u32 (!%p134_p3), %s563_s9, 1  ;;  %v532_v2 = vld [vmem:[%s683_s1 + $0x48] sm:$0xff] (!%p134_p3)   ;;  %vm183_vm0 = vcmask (!%p134_p3), 261120   ;;  %v534_v4 = vld [vmem:[%s683_s1 + $0x50] sm:$0xff] (!%p134_p3)   ;;  %v573_v6 = vmov (!%p134_p3), 0.0  }
   0x7   : > { %137 = sbr.rel (%p134_p3) target bundleno = 259 (0x103), region = 28  ;;  %v531_v1 = vld [vmem:[%s683_s1] sm:$0xff] (!%p134_p3)   ;;  %p162_p4 = scmp.lt.s32.totalorder (!%p134_p3), %s457_s15, 3  ;;  %483 = vmatprep.subr.bf16.mxu0 (!%p134_p3), %v530_v0  ;;  %v533_v3 = vld [vmem:[%s683_s1 + $0x8] sm:$0xff] (!%p134_p3)   ;;  %v535_v5 = vld [vmem:[%s683_s1 + $0x10] sm:$0xff] (!%p134_p3)  }
   0x8   : > { %484 = vmatpush3.bf16.msra.mxu0 (!%p134_p3), %v531_v1  ;;  %v536_v7 = vld [vmem:[%s683_s1 + $0x58] sm:$0xff] (!%p134_p3)   ;;  %v538_v9 = vld [vmem:[%s683_s1 + $0x60] sm:$0xff] (!%p134_p3)   ;;  %v540_v11 = vld [vmem:[%s683_s1 + $0x68] sm:$0xff] (!%p134_p3)  }
   0x9   : > { %485 = vmatprep.subr.bf16.mxu0 (!%p134_p3), %v532_v2  ;;  %v537_v8 = vld [vmem:[%s683_s1 + $0x18] sm:$0xff] (!%p134_p3)   ;;  %v539_v10 = vld [vmem:[%s683_s1 + $0x20] sm:$0xff] (!%p134_p3)   ;;  %v541_v13 = vld [vmem:[%s683_s1 + $0x28] sm:$0xff] (!%p134_p3)  }
   0xa   : > { %v542_v14 = vld [vmem:[%s683_s1 + $0x70] sm:$0xff] (!%p134_p3)   ;;  %v544_v16 = vld [vmem:[%s683_s1 + $0x78] sm:$0xff] (!%p134_p3)  }
   0xb   : > { %v543_v15 = vld [vmem:[%s683_s1 + $0x30] sm:$0xff] (!%p134_p3)   ;;  %v545_v17 = vld [vmem:[%s683_s1 + $0x38] sm:$0xff] (!%p134_p3)  }
   0xc   : > { %486 = vmatpush3.bf16.msra.mxu0 (!%p134_p3), %v533_v3 }
   0xd   : > { %487 = vmatprep.subr.bf16.mxu0 (!%p134_p3), %v534_v4 }
   0xe   : > { %s690_s15 = smov (!%p162_p4, %s457_s15), 3 }
   0xf   : > { %s482_s24 = sshll.u32 %s690_s15, 3 }
  0x10   : > { %s625_s27 = scalar_lea.vmem %s684_s2, %s482_s24  ;;  %488 = vmatpush3.bf16.msra.mxu0 %v535_v5  ;;  %s169_s13 = scalar_lea.vmem %s682_s0, %s482_s24 }
  0x11   : > { %184 = vst.msk [vmem:[%s625_s27] sm:$0xff] %vm183_vm0, %v573_v6  ;;  %185 = vst.msk [vmem:[%s625_s27 + $0x8] sm:$0xff] %vm183_vm0, %v573_v6  ;;  %489 = vmatprep.subr.bf16.mxu0 %v536_v7  ;;  %v548_v12 = vld [vmem:[%s169_s13 + $0x4] ss:$8 sps:$4 sm:$0xff]   ;;  %v546_v18 = vld [vmem:[%s169_s13] ss:$8 sps:$4 sm:$0xff]  }
  0x12   : > { %365 = vmatprep.mubr.bf16.mxu0 %v548_v12 }
  0x14   : > { %490 = vmatpush3.bf16.msra.mxu0 %v537_v8 }
  0x15   : > { %491 = vmatprep.subr.bf16.mxu0 %v538_v9 }
  0x18   : > { %492 = vmatpush3.bf16.msra.mxu0 %v539_v10  ;;  %v223_v20 = vld [vmem:[%s625_s27] sm:$0xff]  ;;  %v224_v24 = vld [vmem:[%s625_s27 + $0x8] sm:$0xff] }
  0x19   : > { %493 = vmatprep.subr.bf16.mxu0 %v540_v11 }
  0x1c   : > { %494 = vmatpush3.bf16.msra.mxu0 %v541_v13 }
  0x1d   : > { %495 = vmatprep.subr.bf16.mxu0 %v542_v14 }
  0x20   : > { %496 = vmatpush3.bf16.msra.mxu0 %v543_v15 }
  0x21   : > { %497 = vmatprep.subr.bf16.mxu0 %v544_v16 }
  0x24   : > { %498 = vmatpush3.bf16.msra.mxu0 %v545_v17 }
  0x27   : > { %366 = vmatmul.mubr.bf16.vlgmr.msra.gmra.mrb[0].mxu0 %v546_v18 }
  0xfa   : > { %v499_v19 = vpop.f32.mrb[0].mxu0 }
  0xfb   : > { %v500_v21 = vpop.f32.mrb[1].mxu0 }
  0xfc   : > { %v501_v22 = vadd.f32 %v500_v21, %v499_v19  ;;  %v502_v23 = vpop.f32.mrb[2].mxu0 }
  0xfd   : > { %v503_v25 = vpop.f32.mrb[3].mxu0 }
  0xfe   : > { %v374_v26 = vadd.f32 %v501_v22, %v223_v20  ;;  %v504_v27 = vadd.f32 %v503_v25, %v502_v23 }
 0x100   : > { %v375_v28 = vadd.f32 %v504_v27, %v224_v24  ;;  %377 = vst.msk [vmem:[%s625_s27] sm:$0xff] %vm183_vm0, %v374_v26 }
 0x102   : > { %378 = vst.msk [vmem:[%s625_s27 + $0x8] sm:$0xff] %vm183_vm0, %v375_v28 }
 0x103 PF: > { %s12_s11 = sadd.s32 1, %s571_s11   ;;  %s685_s9 = smov %s567_s10 }
 0x104   : > { %p9_p5 = scmp.ge.s32.totalorder %s12_s11, 4   ;;  %s686_s10 = smov %s688_s12 }
 0x106   :  { %11 = sbr.rel (!%p9_p5) target bundleno = 2 (0x2), region = 63 }

</bundles_post_ra>
